<compile_context>
chip_gen: v7x
topology: tpu7x:2x2x1
jax: 0.10.0
libtpu: 0.0.40
codegen_flags: <defaults>
</compile_context>

<pallas_src>
import math

import jax
import jax.numpy as jnp
from jax.experimental import pallas as pl
from jax.experimental.pallas import tpu as pltpu

# Plain Python float so it is inlined into the jaxpr instead of being captured
# as a traced f32[] constant (previous compile failure).
NEG_INF = -1e30

_VMEM_LIMIT = 32 * 1024 * 1024  # explicit scoped-VMEM budget (fits all gens)


# ----------------------------------------------------------------------------
# Kernel A: fused Q / KV input projections (each token projected exactly once)
# ----------------------------------------------------------------------------
def _make_proj_kernel(d_out, scale):
    def kernel(xq_ref, xkv_ref, wq_ref, wkv_ref, q_ref, k_ref, v_ref):
        # Q projection with the softmax scale folded in.
        q = jnp.dot(xq_ref[0], wq_ref[...], preferred_element_type=jnp.float32)
        q_ref[0] = (q * scale).astype(jnp.bfloat16)
        # Fused K/V projection: one MXU matmul per token tile.
        kv = jnp.dot(xkv_ref[0], wkv_ref[...], preferred_element_type=jnp.float32)
        k_ref[0] = kv[:, :d_out].astype(jnp.bfloat16)
        v_ref[0] = kv[:, d_out:].astype(jnp.bfloat16)

    return kernel


def _project_qkv(x_q16, x_kv16, wq_t, wkv_t, num_heads, tile):
    B, T, d_in = x_q16.shape
    d_out = wq_t.shape[1]
    head_dim = d_out // num_heads
    scale = 1.0 / math.sqrt(head_dim)
    n_tiles = T // tile

    kernel = _make_proj_kernel(d_out, scale)

    return pl.pallas_call(
        kernel,
        out_shape=[jax.ShapeDtypeStruct((B, T, d_out), jnp.bfloat16)] * 3,
        grid=(B, n_tiles),
        in_specs=[
            pl.BlockSpec((1, tile, d_in), lambda b, i: (b, i, 0)),      # x_q  (bf16)
            pl.BlockSpec((1, tile, d_in), lambda b, i: (b, i, 0)),      # x_kv (bf16)
            pl.BlockSpec((d_in, d_out), lambda b, i: (0, 0)),           # Wq^T
            pl.BlockSpec((d_in, 2 * d_out), lambda b, i: (0, 0)),       # Wkv^T
        ],
        out_specs=[
            pl.BlockSpec((1, tile, d_out), lambda b, i: (b, i, 0)),     # q (scaled)
            pl.BlockSpec((1, tile, d_out), lambda b, i: (b, i, 0)),     # k
            pl.BlockSpec((1, tile, d_out), lambda b, i: (b, i, 0)),     # v
        ],
        compiler_params=pltpu.CompilerParams(
            dimension_semantics=("parallel", "parallel"),
            vmem_limit_bytes=_VMEM_LIMIT),
    )(x_q16, x_kv16, wq_t, wkv_t)


# ----------------------------------------------------------------------------
# Kernel B: causal flash attention over a trapezoid grid + output projection
# ----------------------------------------------------------------------------
def _make_attn_kernel(num_heads, head_dim, tile):
    d_out = num_heads * head_dim

    def kernel(qi_tab, ki_tab, q_ref, k_ref, v_ref, wp_ref, bp_ref, o_ref,
               m_scr, l_scr, acc_scr):
        step = pl.program_id(1)
        qi = qi_tab[step]
        ki = ki_tab[step]

        # ---- per-(batch, q-tile) init: reset the online-softmax state ------
        @pl.when(ki == 0)
        def _init():
            m_scr[...] = jnp.full((tile, num_heads), NEG_INF, jnp.float32)
            l_scr[...] = jnp.zeros((tile, num_heads), jnp.float32)
            acc_scr[...] = jnp.zeros((tile, d_out), jnp.float32)

        def attend(apply_diag_mask):
            q_full = q_ref[0]          # (tile, d_out) bf16, scale pre-folded
            k_full = k_ref[0]          # (tile, d_out) bf16
            v_full = v_ref[0]          # (tile, d_out) bf16
            m_prev = m_scr[...]        # (tile, H)     f32
            l_prev = l_scr[...]        # (tile, H)     f32
            acc_prev = acc_scr[...]    # (tile, d_out) f32

            if apply_diag_mask:
                # Diagonal tile (qi == ki, tile_q == tile_kv): local causal mask.
                row = jax.lax.broadcasted_iota(jnp.int32, (tile, tile), 0)
                col = jax.lax.broadcasted_iota(jnp.int32, (tile, tile), 1)
                diag_mask = row >= col

            m_cols, l_cols, acc_cols = [], [], []
            # TODO(synk): for num_heads >= 8 use lax.fori_loop + pl.ds to bound
            #             the live range of each (tile, tile) score block.
            for h in range(num_heads):
                sl = slice(h * head_dim, (h + 1) * head_dim)
                # q @ k^T without materializing a transpose.
                s = jax.lax.dot_general(
                    q_full[:, sl], k_full[:, sl], (((1,), (1,)), ((), ())),
                    preferred_element_type=jnp.float32)          # (tile, tile)
                if apply_diag_mask:
                    s = jnp.where(diag_mask, s, NEG_INF)

                m_p = m_prev[:, h:h + 1]
                m_n = jnp.maximum(m_p, jnp.max(s, axis=-1, keepdims=True))
                alpha = jnp.exp(m_p - m_n)
                p = jnp.exp(s - m_n)
                l_cols.append(alpha * l_prev[:, h:h + 1]
                              + jnp.sum(p, axis=-1, keepdims=True))
                pv = jnp.dot(p.astype(jnp.bfloat16), v_full[:, sl],
                             preferred_element_type=jnp.float32)  # (tile, hd)
                acc_cols.append(alpha * acc_prev[:, sl] + pv)
                m_cols.append(m_n)

            # Single lane-dense store per scratch buffer per KV tile.
            l_new = jnp.concatenate(l_cols, axis=-1)
            acc_new = jnp.concatenate(acc_cols, axis=-1)
            m_scr[...] = jnp.concatenate(m_cols, axis=-1)
            l_scr[...] = l_new
            acc_scr[...] = acc_new
            return l_new, acc_new

        # Off-diagonal tiles (ki < qi): fully visible, no mask needed.
        @pl.when(ki < qi)
        def _off_diag():
            attend(apply_diag_mask=False)

        # Diagonal tile: masked attend, then finalize (it is the last KV tile
        # visited for this q row on the trapezoid grid).
        @pl.when(ki == qi)
        def _diag_and_finalize():
            l_new, acc_new = attend(apply_diag_mask=True)
            # Exact normalization (pl.reciprocal(approx=True) would use the
            # EUP slot but adds ~1e-3 relative error).
            inv_l = 1.0 / l_new                                    # (tile, H)
            ctx_cols = [acc_new[:, h * head_dim:(h + 1) * head_dim]
                        * inv_l[:, h:h + 1] for h in range(num_heads)]
            ctx = jnp.concatenate(ctx_cols, axis=-1).astype(jnp.bfloat16)
            out = jnp.dot(ctx, wp_ref[...],
                          preferred_element_type=jnp.float32) + bp_ref[...]
            o_ref[0] = out.astype(o_ref.dtype)

    return kernel


def _pick_tile(T):
    # MXU-aligned tiles when the sequence allows it; otherwise one full tile.
    for t in (256, 128):
        if T % t == 0:
            return t
    return T


def multi_head_cross_attention(x_q, x_kv, params, num_heads):
    """x_q, x_kv: (B, T, d_in).  params: pre-transposed bf16 weights + f32 bias."""
    B, T, d_in = x_q.shape
    # The local row>=col causal mask on the diagonal tile requires identical
    # Q / KV tilings of the same sequence length.
    assert x_kv.shape == (B, T, d_in), "kernel requires T_q == T_kv"
    d_out = params["wq_t"].shape[1]
    assert d_out % num_heads == 0
    head_dim = d_out // num_heads

    tile = _pick_tile(T)
    assert T % tile == 0
    nq = T // tile

    # Cast activations to bf16 once in the wrapper (halves activation HBM
    # traffic, removes per-tile in-kernel casts).
    x_q16 = x_q.astype(jnp.bfloat16)
    x_kv16 = x_kv.astype(jnp.bfloat16)

    # ---- pass 1: projections (each token projected exactly once) -----------
    q, k, v = _project_qkv(x_q16, x_kv16, params["wq_t"], params["wkv_t"],
                           num_heads, tile)

    # ---- pass 2: flash attention over the causal trapezoid + out proj ------
    qi_list, ki_list = [], []
    for qi in range(nq):
        for ki in range(qi + 1):        # only tiles on/below the diagonal
            qi_list.append(qi)
            ki_list.append(ki)
    qi_tab = jnp.asarray(qi_list, dtype=jnp.int32)
    ki_tab = jnp.asarray(ki_list, dtype=jnp.int32)
    n_steps = len(qi_list)

    kernel = _make_attn_kernel(num_heads, head_dim, tile)

    grid_spec = pltpu.PrefetchScalarGridSpec(
        num_scalar_prefetch=2,
        grid=(B, n_steps),
        in_specs=[
            pl.BlockSpec((1, tile, d_out), lambda b, s, qt, kt: (b, qt[s], 0)),  # q
            pl.BlockSpec((1, tile, d_out), lambda b, s, qt, kt: (b, kt[s], 0)),  # k
            pl.BlockSpec((1, tile, d_out), lambda b, s, qt, kt: (b, kt[s], 0)),  # v
            pl.BlockSpec((d_out, d_out), lambda b, s, qt, kt: (0, 0)),           # Wproj^T
            pl.BlockSpec((1, d_out), lambda b, s, qt, kt: (0, 0)),               # bproj
        ],
        out_specs=pl.BlockSpec((1, tile, d_out),
                               lambda b, s, qt, kt: (b, qt[s], 0)),
        scratch_shapes=[
            pltpu.VMEM((tile, num_heads), jnp.float32),   # running max  (per head)
            pltpu.VMEM((tile, num_heads), jnp.float32),   # running sum  (per head)
            pltpu.VMEM((tile, d_out), jnp.float32),       # output accumulator
        ],
    )

    return pl.pallas_call(
        kernel,
        out_shape=jax.ShapeDtypeStruct((B, T, d_out), jnp.float32),
        grid_spec=grid_spec,
        compiler_params=pltpu.CompilerParams(
            dimension_semantics=("parallel", "arbitrary"),
            vmem_limit_bytes=_VMEM_LIMIT),
    )(qi_tab, ki_tab, q, k, v, params["wp_t"], params["bp"])


def reference_mhca(x_q, x_kv, params, num_heads):
    """Pure-JAX f32 reference matching the PyTorch forward (attn_mask=None)."""
    wq = params["wq_t"].astype(jnp.float32)
    wkv = params["wkv_t"].astype(jnp.float32)
    wp = params["wp_t"].astype(jnp.float32)
    bp = params["bp"].astype(jnp.float32)
    d_out = wq.shape[1]
    hd = d_out // num_heads
    B, T, _ = x_q.shape

    q = x_q @ wq
    kv = x_kv @ wkv
    k, v = kv[..., :d_out], kv[..., d_out:]
    qh = q.reshape(B, T, num_heads, hd).transpose(0, 2, 1, 3)
    kh = k.reshape(B, T, num_heads, hd).transpose(0, 2, 1, 3)
    vh = v.reshape(B, T, num_heads, hd).transpose(0, 2, 1, 3)
    s = jnp.einsum("bhtd,bhsd->bhts", qh, kh) / math.sqrt(hd)
    causal = jnp.tril(jnp.ones((T, T), dtype=bool))
    s = jnp.where(causal[None, None], s, -jnp.inf)
    a = jax.nn.softmax(s, axis=-1)
    ctx = jnp.einsum("bhts,bhsd->bhtd", a, vh)
    ctx = ctx.transpose(0, 2, 1, 3).reshape(B, T, d_out)
    return ctx @ wp + bp


if __name__ == "__main__":
    # small shapes consistent with the module
    B, T, d_in, d_out, num_heads = 2, 8, 32, 32, 4

    key = jax.random.PRNGKey(0)
    k_xq, k_xkv, k_wq, k_wkv, k_wp, k_bp = jax.random.split(key, 6)

    x_q = jax.random.normal(k_xq, (B, T, d_in), dtype=jnp.float32)
    x_kv = jax.random.normal(k_xkv, (B, T, d_in), dtype=jnp.float32)

    # Deterministic parameter init mimicking nn.Linear shapes:
    #   q.weight    : (d_out, d_in)        (bias=False)
    #   kv.weight   : (2*d_out, d_in)      (bias=False)
    #   proj.weight : (d_out, d_out), proj.bias : (d_out,)
    bound_q = 1.0 / math.sqrt(d_in)
    bound_p = 1.0 / math.sqrt(d_out)
    wq = jax.random.uniform(k_wq, (d_out, d_in), minval=-bound_q, maxval=bound_q)
    wkv = jax.random.uniform(k_wkv, (2 * d_out, d_in), minval=-bound_q, maxval=bound_q)
    wp = jax.random.uniform(k_wp, (d_out, d_out), minval=-bound_p, maxval=bound_p)
    bp = jax.random.uniform(k_bp, (d_out,), minval=-bound_p, maxval=bound_p)

    # cat([q, kv]) then view(..., 3, H, hd) means: k = kv[:d_out], v = kv[d_out:].
    # Weights are pre-transposed and stored in bf16 (MXU dtype); bias stays f32.
    params = {
        "wq_t": wq.T.astype(jnp.bfloat16),                 # (d_in, d_out)
        "wkv_t": wkv.T.astype(jnp.bfloat16),               # (d_in, 2*d_out)
        "wp_t": wp.T.astype(jnp.bfloat16),                 # (d_out, d_out)
        "bp": bp.reshape(1, d_out).astype(jnp.float32),    # (1, d_out)
    }

    out = multi_head_cross_attention(x_q, x_kv, params, num_heads)
    out = jax.block_until_ready(out)

    ref = reference_mhca(x_q, x_kv, params, num_heads)
    assert out.shape == (B, T, d_out)
    # bf16 matmuls inside the kernels -> loosened tolerances vs the f32 reference
    assert jnp.allclose(out, ref, atol=5e-2, rtol=5e-2), "mismatch vs JAX reference"

    print("KERNEL_OK")
</pallas_src>

<mosaic_0001>
module attributes {stable_mosaic.version = 11 : i64} {
  func.func @kernel(%arg0: i32, %arg1: i32, %arg2: memref<1x8x32xbf16, #tpu.memory_space<vmem>>, %arg3: memref<1x8x32xbf16, #tpu.memory_space<vmem>>, %arg4: memref<32x32xbf16, #tpu.memory_space<vmem>>, %arg5: memref<32x64xbf16, #tpu.memory_space<vmem>>, %arg6: memref<1x8x32xbf16, #tpu.memory_space<vmem>>, %arg7: memref<1x8x32xbf16, #tpu.memory_space<vmem>>, %arg8: memref<1x8x32xbf16, #tpu.memory_space<vmem>>) attributes {dimension_semantics = [#tpu.dimension_semantics<parallel>, #tpu.dimension_semantics<parallel>], iteration_bounds = array<i64: 2, 1>, scalar_prefetch = 0 : i64, scratch_operands = 0 : i64, tpu.core_type = #tpu.core_type<tc>, window_params = [{transform_indices = @transform_0, window_bounds = array<i64: 1, 8, 32>}, {transform_indices = @transform_1, window_bounds = array<i64: 1, 8, 32>}, {pipeline_mode = #tpu.pipeline_mode<synchronous>, transform_indices = @transform_2, window_bounds = array<i64: 32, 32>}, {pipeline_mode = #tpu.pipeline_mode<synchronous>, transform_indices = @transform_3, window_bounds = array<i64: 32, 64>}, {transform_indices = @transform_4, window_bounds = array<i64: 1, 8, 32>}, {transform_indices = @transform_5, window_bounds = array<i64: 1, 8, 32>}, {transform_indices = @transform_6, window_bounds = array<i64: 1, 8, 32>}]} {
    %c0 = arith.constant 0 : index
    %c0_0 = arith.constant 0 : index
    %c0_1 = arith.constant 0 : index
    %0 = vector.load %arg2[%c0, %c0_0, %c0_1] : memref<1x8x32xbf16, #tpu.memory_space<vmem>>, vector<1x8x32xbf16>
    %1 = vector.shape_cast %0 : vector<1x8x32xbf16> to vector<8x32xbf16>
    %c0_2 = arith.constant 0 : index
    %c0_3 = arith.constant 0 : index
    %2 = vector.load %arg4[%c0_2, %c0_3] : memref<32x32xbf16, #tpu.memory_space<vmem>>, vector<32x32xbf16>
    %cst = arith.constant dense<0.000000e+00> : vector<8x32xf32>
    %3 = tpu.matmul %1, %2, %cst {dimension_numbers = #tpu.dot_dimension_numbers<[1], [0], [0], [1], [0, 0, 1, 1], [], []>} : vector<8x32xbf16>, vector<32x32xbf16>, vector<8x32xf32> -> vector<8x32xf32>
    %cst_4 = arith.constant 0.353553385 : f32
    %4 = vector.broadcast %cst_4 : f32 to vector<8x32xf32>
    %5 = arith.mulf %3, %4 : vector<8x32xf32>
    %6 = arith.truncf %5 : vector<8x32xf32> to vector<8x32xbf16>
    %c0_5 = arith.constant 0 : index
    %c0_6 = arith.constant 0 : index
    %c0_7 = arith.constant 0 : index
    %7 = vector.load %arg6[%c0_5, %c0_6, %c0_7] : memref<1x8x32xbf16, #tpu.memory_space<vmem>>, vector<1x8x32xbf16>
    %8 = vector.shape_cast %7 : vector<1x8x32xbf16> to vector<8x32xbf16>
    %9 = vector.shape_cast %6 : vector<8x32xbf16> to vector<1x8x32xbf16>
    tpu.vector_store %arg6[%c0_5, %c0_6, %c0_7], %9 {strides = array<i32>} : memref<1x8x32xbf16, #tpu.memory_space<vmem>>, vector<1x8x32xbf16>,
    %c0_8 = arith.constant 0 : index
    %c0_9 = arith.constant 0 : index
    %c0_10 = arith.constant 0 : index
    %10 = vector.load %arg3[%c0_8, %c0_9, %c0_10] : memref<1x8x32xbf16, #tpu.memory_space<vmem>>, vector<1x8x32xbf16>
    %11 = vector.shape_cast %10 : vector<1x8x32xbf16> to vector<8x32xbf16>
    %c0_11 = arith.constant 0 : index
    %c0_12 = arith.constant 0 : index
    %12 = vector.load %arg5[%c0_11, %c0_12] : memref<32x64xbf16, #tpu.memory_space<vmem>>, vector<32x64xbf16>
    %cst_13 = arith.constant dense<0.000000e+00> : vector<8x64xf32>
    %13 = tpu.matmul %11, %12, %cst_13 {dimension_numbers = #tpu.dot_dimension_numbers<[1], [0], [0], [1], [0, 0, 1, 1], [], []>} : vector<8x32xbf16>, vector<32x64xbf16>, vector<8x64xf32> -> vector<8x64xf32>
    %14 = vector.extract_strided_slice %13 {offsets = [0, 0], sizes = [8, 32], strides = [1, 1]} : vector<8x64xf32> to vector<8x32xf32>
    %15 = arith.truncf %14 : vector<8x32xf32> to vector<8x32xbf16>
    %c0_14 = arith.constant 0 : index
    %c0_15 = arith.constant 0 : index
    %c0_16 = arith.constant 0 : index
    %16 = vector.load %arg7[%c0_14, %c0_15, %c0_16] : memref<1x8x32xbf16, #tpu.memory_space<vmem>>, vector<1x8x32xbf16>
    %17 = vector.shape_cast %16 : vector<1x8x32xbf16> to vector<8x32xbf16>
    %18 = vector.shape_cast %15 : vector<8x32xbf16> to vector<1x8x32xbf16>
    tpu.vector_store %arg7[%c0_14, %c0_15, %c0_16], %18 {strides = array<i32>} : memref<1x8x32xbf16, #tpu.memory_space<vmem>>, vector<1x8x32xbf16>,
    %19 = vector.extract_strided_slice %13 {offsets = [0, 32], sizes = [8, 32], strides = [1, 1]} : vector<8x64xf32> to vector<8x32xf32>
    %20 = arith.truncf %19 : vector<8x32xf32> to vector<8x32xbf16>
    %c0_17 = arith.constant 0 : index
    %c0_18 = arith.constant 0 : index
    %c0_19 = arith.constant 0 : index
    %21 = vector.load %arg8[%c0_17, %c0_18, %c0_19] : memref<1x8x32xbf16, #tpu.memory_space<vmem>>, vector<1x8x32xbf16>
    %22 = vector.shape_cast %21 : vector<1x8x32xbf16> to vector<8x32xbf16>
    %23 = vector.shape_cast %20 : vector<8x32xbf16> to vector<1x8x32xbf16>
    tpu.vector_store %arg8[%c0_17, %c0_18, %c0_19], %23 {strides = array<i32>} : memref<1x8x32xbf16, #tpu.memory_space<vmem>>, vector<1x8x32xbf16>,
    return
  }
  func.func @transform_0(%arg0: i32, %arg1: i32) -> (i32, i32, i32) {
    %c0_i32 = arith.constant 0 : i32
    %c0_i32_0 = arith.constant 0 : i32
    return %arg0, %arg1, %c0_i32 : i32, i32, i32
  }
  func.func @transform_1(%arg0: i32, %arg1: i32) -> (i32, i32, i32) {
    %c0_i32 = arith.constant 0 : i32
    %c0_i32_0 = arith.constant 0 : i32
    return %arg0, %arg1, %c0_i32 : i32, i32, i32
  }
  func.func @transform_2(%arg0: i32, %arg1: i32) -> (i32, i32) {
    %c0_i32 = arith.constant 0 : i32
    %c0_i32_0 = arith.constant 0 : i32
    %c0_i32_1 = arith.constant 0 : i32
    return %c0_i32, %c0_i32_0 : i32, i32
  }
  func.func @transform_3(%arg0: i32, %arg1: i32) -> (i32, i32) {
    %c0_i32 = arith.constant 0 : i32
    %c0_i32_0 = arith.constant 0 : i32
    %c0_i32_1 = arith.constant 0 : i32
    return %c0_i32, %c0_i32_0 : i32, i32
  }
  func.func @transform_4(%arg0: i32, %arg1: i32) -> (i32, i32, i32) {
    %c0_i32 = arith.constant 0 : i32
    %c0_i32_0 = arith.constant 0 : i32
    return %arg0, %arg1, %c0_i32 : i32, i32, i32
  }
  func.func @transform_5(%arg0: i32, %arg1: i32) -> (i32, i32, i32) {
    %c0_i32 = arith.constant 0 : i32
    %c0_i32_0 = arith.constant 0 : i32
    return %arg0, %arg1, %c0_i32 : i32, i32, i32
  }
  func.func @transform_6(%arg0: i32, %arg1: i32) -> (i32, i32, i32) {
    %c0_i32 = arith.constant 0 : i32
    %c0_i32_0 = arith.constant 0 : i32
    return %arg0, %arg1, %c0_i32 : i32, i32, i32
  }
}

</mosaic_0001>

<bundles_post_ra>
// kernel: tpu_custom_call.1
= control target key start
LH: loop header
LB: loop body
LE: loop exit
PB: predicated region body
PF: predicated region fallthrough
CT: control target
= control target key end

     0   :  { %s1607_s0 = inlined_call_operand.hbm [shape: bf16[2,8,32], index: 0, kind: input, shape index: {}]   ;;  %s1608_s1 = inlined_call_operand.hbm [shape: bf16[2,8,32], index: 1, kind: input, shape index: {}]   ;;  %s1609_s2 = inlined_call_operand.hbm [shape: bf16[32,32], index: 2, kind: input, shape index: {}]   ;;  %s1610_s3 = inlined_call_operand.hbm [shape: bf16[32,64], index: 3, kind: input, shape index: {}]   ;;  %s1611_s4 = inlined_call_operand.hbm [shape: bf16[2,8,32], index: 4, kind: output, shape index: {0}]   ;;  %s1612_s5 = inlined_call_operand.hbm [shape: bf16[2,8,32], index: 5, kind: output, shape index: {1}]   ;;  %s1613_s6 = inlined_call_operand.hbm [shape: bf16[2,8,32], index: 6, kind: output, shape index: {2}]  }
   0x1   :  { %1621 = sst [smem:[#allocation23_spill]] %s1609_s2 }
   0x2   :  { %1622 = sst [smem:[#allocation24_spill]] %s1610_s3 }
   0x3   :  { %12 = vsyncpa [#allocation3], 0 }
   0x4   :  { %14 = vsyncpa [#allocation3 + $0x1], 0 }
   0x5   :  { %15 = vsyncpa [#allocation6], 0 }
   0x6   :  { %17 = vsyncpa [#allocation6 + $0x1], 0 }
   0x7   :  { %18 = vsyncpa [#allocation9], 0 }
   0x8   :  { %19 = vsyncpa [#allocation4], 0 }
   0x9   :  { %21 = vsyncpa [#allocation4 + $0x1], 0 }
   0xa   :  { %22 = vsyncpa [#allocation12], 0 }
   0xb   :  { %24 = vsyncpa [#allocation12 + $0x1], 0  ;;  %s1231_s21 = smov 0   ;;  %s1233_s22 = smov 0  }
   0xc   :  { %s1235_s23 = smov 0   ;;  %s1237_s24 = smov 0  }
   0xd   :  { %s1239_s25 = smov 0   ;;  %s1241_s26 = smov 0  }
   0xe LB: > { %1623 = sst [smem:[#allocation20_spill]] %s1178_s25  ;;  %s1262_s27 = sadd.s32 4294967295, %s1182_s26   ;;  %s1182_s26 = sphi %s1241_s26, %s30_s26   ;;  %s1178_s25 = sphi %s1239_s25, %s1647_s25   ;;  %s1174_s24 = sphi %s1237_s24, %s1646_s24   ;;  %s1170_s23 = sphi %s1235_s23, %s1650_s23   ;;  %s1166_s22 = sphi %s1233_s22, %s1649_s22   ;;  %s1162_s21 = sphi %s1231_s21, %s1648_s21  }
   0xf   : > { %s1615_s28 = sadd.s32 4294967294, %s1182_s26   ;;  %p64_p0 = scmp.ne.s32.totalorder %s1166_s22, %s1162_s21 }
  0x10   : > { %p1614_p1 = scmp.eq.s32.totalorder %s1262_s27, 0  ;;  %p166_p3 = scmp.eq.s32.totalorder %s1615_s28, 1 }
  0x11   : > { %p751_p5 = scmp.ge.s32.totalorder %s1182_s26, 1  ;;  %p229_p7 = scmp.lt.s32.totalorder %s1182_s26, 3 }
  0x12   : > { %p1273_p4 = por %p1614_p1, %p64_p0  ;;  %p1278_p6 = por %p166_p3, %p64_p0 }
  0x13   : > { %p1283_p8 = pnand %p751_p5, %p229_p7  ;;  %s1184_s8 = smov [#allocation7]  }
  0x14   : > { %s1624_s29 = scalar_select %p1273_p4, 1, 0 }
  0x15   : > { %s1625_s30 = scalar_select %p1278_p6, 1, 0 }
  0x16   : > { %s1626_s7 = scalar_select %p1283_p8, 1, 0 }
  0x17   : > { %s241_s9 = sshll.u32 %s1184_s8, 4  ;;  %p823_p9 = pneg %p1283_p8  ;;  %s1287_s9 = int_to_ptr.vmem [resolvable:$true] %s241_s9 }
  0x18   : > { %s1185_s11 = smov [#allocation8]   ;;  %s1628_s2 = sld [smem:[#allocation23_spill]] }
  0x19   : > { %p1294_p11 = pnand %p823_p9, %p1614_p1  ;;  %s254_s12 = sshll.u32 %s1185_s11, 4  ;;  %s1298_s12 = int_to_ptr.vmem [resolvable:$true] %s254_s12 }
  0x1b   : > { %p914_p13 = pneg %p1294_p11 }
  0x1e   : > { %s912_s15 = scalar_lea.hbm %s1628_s2, 256 }
  0x1f   : > { %p913_p12 = scmp.ne.s32.totalorder %s1628_s2, %s912_s15  ;;  %p919_p5 = scmp.lt.u32.totalorder %s912_s15, %s1628_s2 }
  0x21   : > { %p915_p0 = pnand %p914_p13, %p913_p12 }
  0x23   : > { %p916_p3 = pneg %p915_p0 }
  0x25   : > { %p921_p7 = pnand %p919_p5, %p916_p3 }
  0x27   : > { %924 = shalt.err (!%p921_p7)
}
  0x28   : > { %s925_s20 = scalar_lea.vmem %s1287_s9, 256  ;;  %p933_p2 = scmp.lt.s32.totalorder %s1287_s9, %s1287_s9 }
  0x29   : > { %p926_p9 = scmp.ne.s32.totalorder %s1287_s9, %s925_s20  ;;  %p934_p12 = scmp.lt.s32.totalorder %s925_s20, %s925_s20 }
  0x2b   : > { %p928_p10 = pnand %p926_p9, %p914_p13  ;;  %p935_p0 = por %p934_p12, %p933_p2 }
  0x2d   : > { %p929_p1 = pneg %p928_p10 }
  0x2f   : > { %p936_p6 = pnand %p935_p0, %p929_p1 }
  0x31   : > { %939 = shalt.err (!%p936_p6)
}
  0x32   : > { %s1186_s8 = smov 64   ;;  %s1187_s11 = smov 4  }
  0x33   : > { %826 = dma.hbm_to_vmem [thread:$0]  (!%p1294_p11), %s1628_s2, 256, %s1287_s9, [#allocation6], %s1186_s8, %s1186_s8, %s1187_s11  }
  0x34   : > { %s1629_s3 = sld [smem:[#allocation24_spill]] }
  0x3a   : > { %s940_s17 = scalar_lea.hbm %s1629_s3, 256 }
  0x3b   : > { %p941_p2 = scmp.ne.s32.totalorder %s1629_s3, %s940_s17  ;;  %p947_p10 = scmp.lt.u32.totalorder %s940_s17, %s1629_s3 }
  0x3d   : > { %p943_p1 = pnand %p941_p2, %p914_p13 }
  0x3f   : > { %p944_p6 = pneg %p943_p1 }
  0x41   : > { %p949_p3 = pnand %p947_p10, %p944_p6 }
  0x43   : > { %952 = shalt.err (!%p949_p3)
}
  0x44   : > { %s953_s9 = scalar_lea.vmem %s1298_s12, 256  ;;  %p961_p12 = scmp.lt.s32.totalorder %s1298_s12, %s1298_s12 }
  0x45   : > { %p954_p5 = scmp.ne.s32.totalorder %s1298_s12, %s953_s9  ;;  %p962_p0 = scmp.lt.s32.totalorder %s953_s9, %s953_s9 }
  0x47   : > { %p956_p7 = pnand %p954_p5, %p914_p13  ;;  %p963_p2 = por %p962_p0, %p961_p12 }
  0x49   : > { %p957_p9 = pneg %p956_p7 }
  0x4b   : > { %p964_p1 = pnand %p963_p2, %p957_p9 }
  0x4d   : > { %967 = shalt.err (!%p964_p1)
}
  0x4e   : > { %829 = dma.hbm_to_vmem [thread:$0]  (!%p1294_p11), %s1629_s3, 256, %s1298_s12, [#allocation9], %s1186_s8, %s1186_s8, %s1187_s11  }
  0x4f   : > { %s42_s14 = sadd.s32 1, %s1178_s25  ;;  %s51_s15 = sadd.s32 1, %s1170_s23 }
  0x50   : > { %p44_p13 = scmp.ge.s32.totalorder %s42_s14, 2  ;;  %p58_p6 = scmp.ne.s32.totalorder %s1170_s23, %s1166_s22 }
  0x51   : > { %p59_p10 = scmp.eq.s32.totalorder %s1182_s26, 0  ;;  %p849_p3 = scmp.lt.s32.totalorder %s1182_s26, 2 }
  0x52   : > { %s1652_s14 = smov (%p44_p13, %s42_s14), 0  ;;  %p1631_p7 = scmp.eq.s32.totalorder %s1262_s27, 1 }
  0x53   : > { %1630 = sst [smem:[#allocation21_spill]] %s1652_s14  ;;  %p60_p5 = por %p59_p10, %p58_p6 }
  0x54   : > { %p1362_p9 = por %p1631_p7, %p58_p6  ;;  %s46_s16 = ssub.s32 %s1178_s25, %s1652_s14 }
  0x55   : > { %s268_s17 = sand.u32 1, %s1170_s23   ;;  %p49_p12 = scmp.eq.s32.totalorder %s46_s16, 0 }
  0x56   : > { %s1632_s10 = scalar_select %p1362_p9, 1, 0 }
  0x57   : > { %s1369_s12 = sshll.u32 %s268_s17, 2  ;;  %s756_s8 = sshll.u32 %s1178_s25, 6 }
  0x58   : > { %s1373_s11 = scalar_select %p49_p12, %s1170_s23, %s51_s15  }
  0x59   : > { %s1378_s20 = scalar_lea.hbm %s1607_s0, %s756_s8  ;;  %s272_s9 = scalar_lea.vmem [#allocation2], %s1369_s12 }
  0x5a   : > { %1633 = sst [smem:[#allocation22_spill]] %s1373_s11  ;;  %s280_s28 = sshll.u32 %s272_s9, 4  ;;  %s1387_s28 = int_to_ptr.vmem [resolvable:$true] %s280_s28 }
  0x5b   : > { %p1383_p11 = pnand %p849_p3, %p60_p5  ;;  %s1392_s18 = scalar_lea.hbm %s1608_s1, %s756_s8 }
  0x5c   : > { %s269_s19 = scalar_lea.sflag [#allocation3], %s268_s17  ;;  %s968_s2 = scalar_lea.hbm %s1378_s20, 64 }
  0x5d   : > { %p969_p0 = scmp.ne.s32.totalorder %s1378_s20, %s968_s2  ;;  %p970_p2 = pneg %p1383_p11 }
  0x5e   : > { %s973_s14 = scalar_lea.hbm %s1607_s0, 128  ;;  %p974_p6 = scmp.lt.u32.totalorder %s1378_s20, %s1607_s0 }
  0x5f   : > { %p971_p1 = pnand %p970_p2, %p969_p0  ;;  %p975_p10 = scmp.lt.u32.totalorder %s973_s14, %s968_s2 }
  0x60   : > { %p977_p5 = scmp.lt.u32.totalorder %s968_s2, %s1378_s20 }
  0x61   : > { %p972_p13 = pneg %p971_p1  ;;  %p976_p3 = por %p975_p10, %p974_p6 }
  0x63   : > { %p978_p7 = por %p977_p5, %p976_p3 }
  0x65   : > { %p979_p12 = pnand %p978_p7, %p972_p13 }
  0x67   : > { %982 = shalt.err (!%p979_p12)
}
  0x68   : > { %s983_s17 = scalar_lea.vmem %s1387_s28, 64  ;;  %s1188_s3 = smov [#allocation2]  }
  0x69   : > { %p984_p0 = scmp.ne.s32.totalorder %s1387_s28, %s983_s17  ;;  %s988_s8 = sshll.u32 %s1188_s3, 4  ;;  %s989_s8 = int_to_ptr.vmem [resolvable:$false] %s988_s8 }
  0x6a   : > { %s990_s25 = scalar_lea.vmem %s989_s8, 128  ;;  %p991_p4 = scmp.lt.s32.totalorder %s1387_s28, %s989_s8 }
  0x6b   : > { %p986_p1 = pnand %p984_p0, %p970_p2  ;;  %p992_p6 = scmp.lt.s32.totalorder %s990_s25, %s983_s17 }
  0x6d   : > { %p987_p9 = pneg %p986_p1  ;;  %p993_p10 = por %p992_p6, %p991_p4 }
  0x6f   : > { %p994_p3 = pnand %p993_p10, %p987_p9 }
  0x71   : > { %997 = shalt.err (!%p994_p3)
}
  0x72   : > { %833 = dma.hbm_to_vmem [thread:$0]  (!%p1383_p11), %s1378_s20, 64, %s1387_s28, %s269_s19  }
  0x73   : > { %s287_s2 = sand.u32 1, %s1182_s26   ;;  %s291_s14 = scalar_lea.vmem [#allocation5], %s1369_s12 }
  0x74   : > { %s299_s11 = sshll.u32 %s291_s14, 4  ;;  %s288_s15 = scalar_lea.sflag [#allocation6], %s287_s2  ;;  %s300_s11 = int_to_ptr.vmem [resolvable:$true] %s299_s11 }
  0x75   : > { %s998_s16 = scalar_lea.hbm %s1392_s18, 64  ;;  %s1003_s3 = scalar_lea.hbm %s1608_s1, 128 }
  0x76   : > { %p999_p4 = scmp.ne.s32.totalorder %s1392_s18, %s998_s16  ;;  %p1004_p5 = scmp.lt.u32.totalorder %s1392_s18, %s1608_s1 }
  0x77   : > { %p1005_p7 = scmp.lt.u32.totalorder %s1003_s3, %s998_s16  ;;  %p1007_p0 = scmp.lt.u32.totalorder %s998_s16, %s1392_s18 }
  0x78   : > { %p1001_p9 = pnand %p999_p4, %p970_p2 }
  0x79   : > { %p1006_p12 = por %p1005_p7, %p1004_p5 }
  0x7a   : > { %p1002_p13 = pneg %p1001_p9 }
  0x7b   : > { %p1008_p1 = por %p1007_p0, %p1006_p12 }
  0x7d   : > { %p1009_p6 = pnand %p1008_p1, %p1002_p13 }
  0x7f   : > { %1012 = shalt.err (!%p1009_p6)
}
  0x80   : > { %s1013_s12 = scalar_lea.vmem %s300_s11, 64  ;;  %s1189_s20 = smov [#allocation5]  }
  0x81   : > { %p1014_p10 = scmp.ne.s32.totalorder %s300_s11, %s1013_s12  ;;  %s1018_s28 = sshll.u32 %s1189_s20, 4  ;;  %s1019_s28 = int_to_ptr.vmem [resolvable:$false] %s1018_s28 }
  0x82   : > { %s1020_s19 = scalar_lea.vmem %s1019_s28, 128  ;;  %p1021_p9 = scmp.lt.s32.totalorder %s300_s11, %s1019_s28 }
  0x83   : > { %p1016_p3 = pnand %p1014_p10, %p970_p2  ;;  %p1022_p8 = scmp.lt.s32.totalorder %s1020_s19, %s1013_s12 }
  0x85   : > { %p1017_p4 = pneg %p1016_p3  ;;  %p1023_p5 = por %p1022_p8, %p1021_p9 }
  0x87   : > { %p1024_p7 = pnand %p1023_p5, %p1017_p4 }
  0x89   : > { %1027 = shalt.err (!%p1024_p7)
}
  0x8a   : > { %836 = dma.hbm_to_vmem [thread:$0]  (!%p1383_p11), %s1392_s18, 64, %s300_s11, %s288_s15  }
  0x8b   : > { %p1635_p13 = scmp.ne.s32.totalorder %s1626_s7, 0 }
  0x8c   : > { %s1443_s2 = sand.u32 (!%p1635_p13), 1, %s1166_s22   ;;  %p1636_p8 = scmp.ne.s32.totalorder (!%p1635_p13), %s1624_s29, 0 }
  0x8d   : > { %308 = sbr.rel (%p1635_p13) target bundleno = 512 (0x200), region = 36  ;;  %s1446_s14 = sshll.u32 (!%p1635_p13), %s1443_s2, 2 }
  0x8e   : > { %s311_s16 = scalar_lea.sflag (!%p1635_p13), [#allocation3], %s1443_s2  ;;  %s314_s9 = scalar_lea.vmem (!%p1635_p13), [#allocation2], %s1446_s14 }
  0x94   : > { %1137 = dma.done.wait (%p1636_p8), %s311_s16, 64  }
  0x95   : > { %1139 = vsyncadd (%p1636_p8), %s311_s16, 4294967232  ;;  %s319_s7 = sand.u32 1, %s1262_s27   ;;  %s323_s18 = scalar_lea.vmem [#allocation5], %s1446_s14 }
  0x96   : > { %s320_s13 = scalar_lea.sflag [#allocation6], %s319_s7 }
  0x97   : > { %1141 = dma.done.wait (%p1636_p8), %s320_s13, 64  }
  0x98   : > { %1143 = vsyncadd (%p1636_p8), %s320_s13, 4294967232  ;;  %p1637_p11 = scmp.eq.s32.totalorder %s1262_s27, 0 }
  0x9a   : > { %1145 = dma.done.wait (%p1637_p11), [#allocation6], 256   ;;  %p1638_p2 = pmov %p1637_p11 }
  0x9c   : > { %1147 = vsyncadd (%p1638_p2), [#allocation6], 4294967040  ;;  %p1639_p12 = pmov %p1638_p2 }
  0x9d   : > { %p1640_p0 = pmov %p1638_p2 }
  0x9e   : > { %1149 = dma.done.wait (%p1639_p12), [#allocation9], 256  }
  0x9f   : > { %1151 = vsyncadd (%p1640_p0), [#allocation9], 4294967040  ;;  %v1190_v0 = vmov 0.0   ;;  %vm1191_vm0 = vmmov 0   ;;  %v908_v1 = vld [vmem:[#allocation8] sm:$0xff]   ;;  %v909_v2 = vld [vmem:[#allocation8 + $0x8] sm:$0xff]  }
  0xa0   : > { %797 = vmatprep.subr.bf16.mxu1 %v1190_v0  ;;  %801 = vmatprep.mubr.msk.bf16.mxu1 %vm1191_vm0, %v1190_v0  ;;  %v910_v3 = vld [vmem:[#allocation7] sm:$0xff]   ;;  %v911_v4 = vld [vmem:[#allocation7 + $0x8] sm:$0xff]   ;;  %vm393_vm1 = vcmask 261120   ;;  %v441_v5 = vld [vmem:[%s323_s18] sm:$0xf]  ;;  %s1473_s29 = sshll.u32 %s1174_s24, 6 }
  0xa1   : > { %789 = vmatprep.subr.bf16.mxu0 %v1190_v0  ;;  %793 = vmatprep.mubr.msk.bf16.mxu0 %vm1191_vm0, %v1190_v0  ;;  %v376_v6 = vld [vmem:[%s314_s9] sm:$0xf]  ;;  %s367_s11 = scalar_lea.vmem [#allocation11], %s1446_s14  ;;  %vm439_vm2 = vcmask 257024   ;;  %s1480_s8 = scalar_lea.hbm %s1612_s5, %s1473_s29 }
  0xa2   : > { %798 = vmatpush3.bf16.msra.mxu1 %v908_v1  ;;  %790 = vmatpush3.bf16.msra.mxu0 %v910_v3  ;;  %s549_s15 = sshll.u32 %s367_s11, 4  ;;  %s1192_s24 = smov 96   ;;  %s1482_s15 = int_to_ptr.vmem [resolvable:$true] %s549_s15 }
  0xa3   : > { %799 = vmatprep.subr.bf16.mxu1 %v1190_v0  ;;  %791 = vmatprep.subr.bf16.mxu0 %v1190_v0  ;;  %s360_s25 = scalar_lea.vmem [#allocation10], %s1446_s14  ;;  %s1492_s20 = scalar_lea.sflag [#allocation12], %s319_s7 }
  0xa4   : > { %s1488_s12 = sshll.u32 %s360_s25, 4  ;;  %s1028_s28 = scalar_lea.vmem %s1482_s15, 64  ;;  %s1523_s12 = int_to_ptr.vmem [resolvable:$true] %s1488_s12 }
  0xa5   : > { %p1029_p1 = scmp.ne.s32.totalorder %s1482_s15, %s1028_s28  ;;  %p1641_p6 = scmp.ne.s32.totalorder %s1632_s10, 0 }
  0xa6   : > { %800 = vmatpush3.bf16.msra.mxu1 %v909_v2  ;;  %792 = vmatpush3.bf16.msra.mxu0 %v911_v4  ;;  %s1193_s19 = smov [#allocation11]  }
  0xa7   : > { %p1030_p10 = pnand %p1029_p1, %p1641_p6  ;;  %s1032_s16 = sshll.u32 %s1193_s19, 4  ;;  %s1033_s16 = int_to_ptr.vmem [resolvable:$false] %s1032_s16 }
  0xa8   : > { %s1034_s9 = scalar_lea.vmem %s1033_s16, 128  ;;  %p1035_p4 = scmp.lt.s32.totalorder %s1482_s15, %s1033_s16 }
  0xa9   : > { %802 = vmatmul.mubr.msk.bf16.vlgmr.msra.gmra.mrb[0].mxu1 %vm393_vm1, %v441_v5  ;;  %794 = vmatmul.mubr.msk.bf16.vlgmr.msra.gmra.mrb[0].mxu0 %vm393_vm1, %v376_v6  ;;  %p1031_p3 = pneg %p1030_p10  ;;  %p1036_p9 = scmp.lt.s32.totalorder %s1034_s9, %s1028_s28 }
  0xab   : > { %p1037_p5 = por %p1036_p9, %p1035_p4 }
  0xad   : > { %p1038_p7 = pnand %p1037_p5, %p1031_p3 }
 0x17c   : > { %v495_v7 = vpop.f32.mrb[0].mxu1  ;;  %v431_v12 = vpop.f32.mrb[0].mxu0 }
 0x17d   : > { %v501_v8 = vpack.c.bf16 %v495_v7, %v495_v7  ;;  %v803_v9 = vpop.f32.mrb[1].mxu1  ;;  %v437_v13 = vmul.f32 0.35355338, %v431_v12  ;;  %v795_v14 = vpop.f32.mrb[1].mxu0 }
 0x17e   : > { %v498_v10 = vpop.f32.mrb[2].mxu1 }
 0x17f   : > { %v804_v11 = vpop.f32.mrb[3].mxu1  ;;  %506 = vrot.lane.b32.xlu0 %v501_v8, %s1192_s24  ;;  %502 = vst.msk [vmem:[%s367_s11] sm:$0xf] %vm439_vm2, %v501_v8 }
 0x180   : > { %1041 = shalt.err (!%p1038_p7)
}
 0x181   : > { %s1042_s27 = scalar_lea.hbm %s1480_s8, 64  ;;  %s1046_s18 = scalar_lea.hbm %s1612_s5, 128 }
 0x182   : > { %p1043_p13 = scmp.ne.s32.totalorder %s1480_s8, %s1042_s27  ;;  %p1047_p2 = scmp.lt.u32.totalorder %s1480_s8, %s1612_s5 }
 0x183   : > { %p1048_p12 = scmp.lt.u32.totalorder %s1046_s18, %s1042_s27  ;;  %p1050_p1 = scmp.lt.u32.totalorder %s1042_s27, %s1480_s8 }
 0x184   : > { %p1044_p8 = pnand %p1043_p13, %p1641_p6 }
 0x185   : > { %p1049_p0 = por %p1048_p12, %p1047_p2 }
 0x186   : > { %p1045_p11 = pneg %p1044_p8 }
 0x187   : > { %p1051_p10 = por %p1050_p1, %p1049_p0 }
 0x189   : > { %p1052_p3 = pnand %p1051_p10, %p1045_p11 }
 0x18b   : > { %1055 = shalt.err (!%p1052_p3)
}
 0x18c   : > { %818 = dma.vmem_to_hbm [thread:$0]  (%p1641_p6), %s1482_s15, 64, %s1480_s8, %s1492_s20   ;;  %v434_v15 = vpop.f32.mrb[2].mxu0  ;;  %v438_v16 = vpack.c.bf16 %v437_v13, %v437_v13 }
 0x18d   : > { %v796_v17 = vpop.f32.mrb[3].mxu0  ;;  %s1520_s28 = scalar_lea.hbm %s1611_s4, %s1473_s29  ;;  %s511_s19 = scalar_lea.sflag [#allocation4], %s1443_s2 }
 0x18e   : > { %440 = vst.msk [vmem:[%s360_s25] sm:$0xf] %vm439_vm2, %v438_v16  ;;  %s1056_s16 = scalar_lea.vmem %s1523_s12, 64  ;;  %s1194_s15 = smov [#allocation10]  }
 0x18f   : > { %p1057_p4 = scmp.ne.s32.totalorder %s1523_s12, %s1056_s16  ;;  %s1060_s8 = sshll.u32 %s1194_s15, 4  ;;  %s1061_s8 = int_to_ptr.vmem [resolvable:$false] %s1060_s8 }
 0x190   : > { %s1062_s9 = scalar_lea.vmem %s1061_s8, 128  ;;  %p1063_p7 = scmp.lt.s32.totalorder %s1523_s12, %s1061_s8 }
 0x191   : > { %p1058_p9 = pnand %p1057_p4, %p1641_p6  ;;  %p1064_p13 = scmp.lt.s32.totalorder %s1062_s9, %s1056_s16 }
 0x193   : > { %p1059_p5 = pneg %p1058_p9  ;;  %p1065_p8 = por %p1064_p13, %p1063_p7 }
 0x195   : > { %p1066_p11 = pnand %p1065_p8, %p1059_p5 }
 0x197   : > { %1069 = shalt.err (!%p1066_p11)
}
 0x198   : > { %s1070_s2 = scalar_lea.hbm %s1520_s28, 64  ;;  %s1074_s7 = scalar_lea.hbm %s1611_s4, 128 }
 0x199   : > { %p1071_p2 = scmp.ne.s32.totalorder %s1520_s28, %s1070_s2  ;;  %p1075_p1 = scmp.lt.u32.totalorder %s1520_s28, %s1611_s4 }
 0x19a   : > { %p1076_p10 = scmp.lt.u32.totalorder %s1074_s7, %s1070_s2  ;;  %p1078_p4 = scmp.lt.u32.totalorder %s1070_s2, %s1520_s28 }
 0x19b   : > { %p1072_p12 = pnand %p1071_p2, %p1641_p6 }
 0x19c   : > { %p1077_p3 = por %p1076_p10, %p1075_p1 }
 0x19d   : > { %p1073_p0 = pneg %p1072_p12 }
 0x19e   : > { %p1079_p9 = por %p1078_p4, %p1077_p3 }
 0x1a0   : > { %p1080_p5 = pnand %p1079_p9, %p1073_p0 }
 0x1a2   : > { %1083 = shalt.err (!%p1080_p5)
}
 0x1a3   : > { %817 = dma.vmem_to_hbm [thread:$0]  (%p1641_p6), %s1523_s12, 64, %s1520_s28, %s511_s19  }
 0x1a4   : > { %s374_s11 = scalar_lea.vmem [#allocation13], %s1446_s14  ;;  %s1555_s16 = scalar_lea.hbm %s1613_s6, %s1473_s29 }
 0x1a5   : > { %s563_s17 = sshll.u32 %s374_s11, 4  ;;  %s1195_s14 = smov [#allocation13]   ;;  %s1557_s17 = int_to_ptr.vmem [resolvable:$true] %s563_s17 }
 0x1a6   : > { %s1084_s15 = scalar_lea.vmem %s1557_s17, 64  ;;  %s1088_s12 = sshll.u32 %s1195_s14, 4  ;;  %s1089_s12 = int_to_ptr.vmem [resolvable:$false] %s1088_s12 }
 0x1a7   : > { %p1085_p7 = scmp.ne.s32.totalorder %s1557_s17, %s1084_s15  ;;  %s1090_s28 = scalar_lea.vmem %s1089_s12, 128 }
 0x1a8   : > { %p1091_p11 = scmp.lt.s32.totalorder %s1557_s17, %s1089_s12  ;;  %p1092_p2 = scmp.lt.s32.totalorder %s1090_s28, %s1084_s15 }
 0x1a9   : > { %p1086_p13 = pnand %p1085_p7, %p1641_p6 }
 0x1aa   : > { %p1093_p12 = por %p1092_p2, %p1091_p11 }
 0x1ab   : > { %p1087_p8 = pneg %p1086_p13 }
 0x1ad   : > { %p1094_p0 = pnand %p1093_p12, %p1087_p8 }
 0x1f1   : > { %v507_v18 = vpop.permute.xlu0 %506 }
 0x1f2   : > { %509 = vst.msk [vmem:[%s374_s11] sm:$0xf] %vm439_vm2, %v507_v18 }
 0x1f3   : > { %1097 = shalt.err (!%p1094_p0)
}
 0x1f4   : > { %s1098_s29 = scalar_lea.hbm %s1555_s16, 64  ;;  %s1102_s9 = scalar_lea.hbm %s1613_s6, 128 }
 0x1f5   : > { %p1099_p1 = scmp.ne.s32.totalorder %s1555_s16, %s1098_s29  ;;  %p1103_p4 = scmp.lt.u32.totalorder %s1555_s16, %s1613_s6 }
 0x1f6   : > { %p1104_p9 = scmp.lt.u32.totalorder %s1102_s9, %s1098_s29  ;;  %p1106_p7 = scmp.lt.u32.totalorder %s1098_s29, %s1555_s16 }
 0x1f7   : > { %p1100_p10 = pnand %p1099_p1, %p1641_p6 }
 0x1f8   : > { %p1105_p5 = por %p1104_p9, %p1103_p4 }
 0x1f9   : > { %p1101_p3 = pneg %p1100_p10 }
 0x1fa   : > { %p1107_p13 = por %p1106_p7, %p1105_p5 }
 0x1fc   : > { %p1108_p8 = pnand %p1107_p13, %p1101_p3 }
 0x1fe   : > { %1111 = shalt.err (!%p1108_p8)
}
 0x1ff   : > { %819 = dma.vmem_to_hbm [thread:$0]  (%p1641_p6), %s1557_s17, 64, %s1555_s16, %s1492_s20  }
 0x200 PF: > { %s575_s27 = sand.u32 1, %s1162_s21   ;;  %p1642_p11 = scmp.ne.s32.totalorder %s1625_s30, 0 }
 0x201   : > { %p1643_p2 = scmp.ge.s32.totalorder %s1182_s26, 2  ;;  %s576_s7 = scalar_lea.sflag [#allocation4], %s575_s27 }
 0x203   : > { %p838_p12 = pnand %p1643_p2, %p1642_p11 }
 0x205   : > { %1153 = dma.done.wait (!%p838_p12), %s576_s7, 64  }
 0x206   : > { %1155 = vsyncadd (!%p838_p12), %s576_s7, 4294967232  ;;  %s1644_s13 = sadd.s32 4294967294, %s1182_s26  }
 0x207   : > { %s584_s18 = sand.u32 1, %s1644_s13  }
 0x208   : > { %s585_s11 = scalar_lea.sflag [#allocation12], %s584_s18 }
 0x209   : > { %1157 = dma.done.wait (!%p838_p12), %s585_s11, 128  }
 0x20a   : > { %1159 = vsyncadd (!%p838_p12), %s585_s11, 4294967168  ;;  %s30_s26 = sadd.s32 1, %s1182_s26   ;;  %s1645_s10 = sld [smem:[#allocation22_spill]] }
 0x20b   : > { %p27_p6 = scmp.ge.s32.totalorder %s30_s26, 4   ;;  %s1646_s24 = sld [smem:[#allocation20_spill]] }
 0x20c   : > { %s1647_s25 = sld [smem:[#allocation21_spill]]  ;;  %s1648_s21 = smov %s1166_s22 }
 0x20d   : > { %s1649_s22 = smov %s1170_s23  ;;  %29 = sbr.rel (!%p27_p6) target bundleno = 14 (0xe), region = 134 }
 0x210   : > { %s1650_s23 = smov %s1645_s10 }
 0x214   :  { %599 = vsyncpa [#allocation3], 1 }
 0x215   :  { %601 = vsyncpa [#allocation3 + $0x1], 1 }
 0x216   :  { %602 = vsyncpa [#allocation6], 1 }
 0x217   :  { %604 = vsyncpa [#allocation6 + $0x1], 1 }
 0x218   :  { %605 = vsyncpa [#allocation9], 1 }
 0x219   :  { %606 = vsyncpa [#allocation4], 1 }
 0x21a   :  { %608 = vsyncpa [#allocation4 + $0x1], 1 }
 0x21b   :  { %609 = vsyncpa [#allocation12], 1 }
 0x21c   :  { %611 = vsyncpa [#allocation12 + $0x1], 1 }

</bundles_post_ra>
